<compile_context>
chip_gen: v6e
topology: v6e:2x2x1
jax: 0.10.0
libtpu: 0.0.40
codegen_flags: <defaults>
</compile_context>

<pallas_src>
import math

import jax
import jax.numpy as jnp
from jax.experimental import pallas as pl
from jax.experimental.pallas import tpu as pltpu


# Storage dtype of inter-layer activations and MXU operand dtype.  Set both to jnp.float32
# to reproduce exact f32 semantics; bf16 is the v6e/v7x-recommended configuration.
ACT_DTYPE = jnp.bfloat16
MXU_DTYPE = jnp.bfloat16

_ISIZE_ACT = jnp.dtype(ACT_DTYPE).itemsize

# Under v7x's 64 MiB physical VMEM (default scoped limit is 32 MiB on v6e/v7x); plenty for
# the small blocks used here and leaves headroom once L-tiling lands.
_VMEM_LIMIT_BYTES = 48 * 1024 * 1024


def _cparams(*semantics):
    return pltpu.CompilerParams(dimension_semantics=semantics,
                                vmem_limit_bytes=_VMEM_LIMIT_BYTES)


def _ce(flops, in_arrays, out_nbytes):
    ba = int(sum(int(a.size) * a.dtype.itemsize for a in in_arrays)) + int(out_nbytes)
    return pl.CostEstimate(flops=int(flops), transcendentals=0, bytes_accessed=ba)


# --------------------------------------------------------------------------------------
# In-kernel helpers (im2col stays in the bf16 storage dtype; epilogue math in f32)
# --------------------------------------------------------------------------------------

def _prev_rows(x):
    """s[i] = x[i-1], s[0] = 0 (the conv's zero padding).  Slice + concat of one zero row:
    no full-block iota/compare/where and no pltpu.roll (whose shift must be >= 0)."""
    return jnp.concatenate([jnp.zeros_like(x[:1]), x[:-1]], axis=0)


def _next_rows(x):
    """s[i] = x[i+1], s[L-1] = 0."""
    return jnp.concatenate([x[1:], jnp.zeros_like(x[:1])], axis=0)


def _conv3_phases(phases, w, b):
    """Conv1d(k=3, p=1) + ReLU on an n-phase polyphase decomposition of the sequence
    (x[n*i + p] = phases[p][i]).  All phase im2cols are stacked along the sublane axis so
    the (3*Cin, Cout) weight is fed to the MXU exactly once.  Returns f32 phase outputs."""
    n = len(phases)
    ims = []
    for p in range(n):
        left = phases[p - 1] if p > 0 else _prev_rows(phases[n - 1])
        right = phases[p + 1] if p < n - 1 else _next_rows(phases[0])
        ims.append(jnp.concatenate([left, phases[p], right], axis=-1))
    im = jnp.concatenate(ims, axis=0) if n > 1 else ims[0]
    im = im.astype(MXU_DTYPE)                                   # no-op when storage==MXU
    y = jnp.dot(im, w, preferred_element_type=jnp.float32) + b  # f32 accumulate + f32 bias
    y = jnp.maximum(y, 0.0)                                     # ReLU (f32 epilogue)
    lp = phases[0].shape[0]
    return [y[p * lp:(p + 1) * lp] for p in range(n)]


def _unpool_select_add(y, sk_ev, sk_od):
    """MaxUnpool1d(2,2) followed by the skip add, all in f32.  The pooling argmax is
    re-derived from the skip tensor itself (ties -> even position)."""
    take_even = sk_ev >= sk_od
    zero = jnp.zeros_like(y)
    x_ev = jnp.where(take_even, y, zero) + sk_ev
    x_od = jnp.where(take_even, zero, y) + sk_od
    return x_ev, x_od


# --------------------------------------------------------------------------------------
# Kernels
# --------------------------------------------------------------------------------------

def _conv_kernel(x_ref, w_ref, b_ref, o_ref):
    """Standalone Conv1d(k=3,p=1)+ReLU on a channels-last (L, Cin) block, Cout-tiled.
    TODO(synk): when Cout > 128, build the im2col once into VMEM scratch instead of per
    Cout tile (only one tile at the channel counts exercised here)."""
    (y,) = _conv3_phases([x_ref[...]], w_ref[...], b_ref[...])
    o_ref[...] = y.astype(o_ref.dtype)


def _conv_pool_kernel(xp_ref, w_ref, b_ref, skip_ref, pool_ref):
    """Fused Conv1d(k=3)+ReLU -> MaxPool1d(2,2).  xp is even|odd lane-packed (L/2, 2Cin);
    outputs: lane-packed pre-pool skip (L/2, 2Cout) and pooled (L/2, Cout)."""
    xp = xp_ref[...]
    c = xp.shape[-1] // 2
    y0, y1 = _conv3_phases([xp[:, :c], xp[:, c:]], w_ref[...], b_ref[...])
    skip_ref[...] = jnp.concatenate([y0, y1], axis=-1).astype(skip_ref.dtype)
    pool_ref[...] = jnp.maximum(y0, y1).astype(pool_ref.dtype)


def _conv_pool2_kernel(xq_ref, w_ref, b_ref, skip1_ref, skip2_ref, pool_ref):
    """Fused Conv1d(k=3)+ReLU -> MaxPool -> MaxPool (the 'M','M' pattern).  4-phase
    polyphase: emits both skip levels and the twice-pooled output in one pass."""
    xq = xq_ref[...]
    c = xq.shape[-1] // 4
    phases = [xq[:, i * c:(i + 1) * c] for i in range(4)]
    y = _conv3_phases(phases, w_ref[...], b_ref[...])
    skip1_ref[...] = jnp.concatenate(y, axis=-1).astype(skip1_ref.dtype)
    p0 = jnp.maximum(y[0], y[1])
    p1 = jnp.maximum(y[2], y[3])
    skip2_ref[...] = jnp.concatenate([p0, p1], axis=-1).astype(skip2_ref.dtype)
    pool_ref[...] = jnp.maximum(p0, p1).astype(pool_ref.dtype)


def _unpool_conv_kernel(y_ref, skp_ref, w_ref, b_ref, o_ref):
    """Fused MaxUnpool1d(2,2) + skip add -> Conv1d(k=3)+ReLU; output lane-packed."""
    y = y_ref[...].astype(jnp.float32)
    sk = skp_ref[...].astype(jnp.float32)
    c = y.shape[-1]
    x0, x1 = _unpool_select_add(y, sk[:, :c], sk[:, c:])
    z0, z1 = _conv3_phases([x0.astype(ACT_DTYPE), x1.astype(ACT_DTYPE)],
                           w_ref[...], b_ref[...])
    o_ref[...] = jnp.concatenate([z0, z1], axis=-1).astype(o_ref.dtype)


def _unpool2_conv_kernel(y_ref, sk2_ref, sk1_ref, w_ref, b_ref, o_ref):
    """Fused ('U','U',conv): two MaxUnpool1d(2,2)+skip-add levels chained with the conv,
    so the half-resolution intermediate never touches HBM."""
    y = y_ref[...].astype(jnp.float32)
    c = y.shape[-1]
    s2 = sk2_ref[...].astype(jnp.float32)
    z_a, z_b = _unpool_select_add(y, s2[:, :c], s2[:, c:])
    # Mirror the bf16 storage policy of the (now fused away) intermediate activation.
    z_a = z_a.astype(ACT_DTYPE).astype(jnp.float32)
    z_b = z_b.astype(ACT_DTYPE).astype(jnp.float32)
    s1 = sk1_ref[...].astype(jnp.float32)
    x0, x1 = _unpool_select_add(z_a, s1[:, 0 * c:1 * c], s1[:, 1 * c:2 * c])
    x2, x3 = _unpool_select_add(z_b, s1[:, 2 * c:3 * c], s1[:, 3 * c:4 * c])
    phases = [t.astype(ACT_DTYPE) for t in (x0, x1, x2, x3)]
    z = _conv3_phases(phases, w_ref[...], b_ref[...])
    o_ref[...] = jnp.concatenate(z, axis=-1).astype(o_ref.dtype)


def _maxpool_kernel(xp_ref, o_ref):
    """Fallback standalone MaxPool1d(2,2) on an even|odd lane-packed (L/2, 2C) block."""
    xp = xp_ref[...]
    c = xp.shape[-1] // 2
    o_ref[...] = jnp.maximum(xp[:, :c], xp[:, c:]).astype(o_ref.dtype)


def _unpool_add_kernel(y_ref, skp_ref, o_ref):
    """Fallback standalone MaxUnpool1d(2,2) + skip add; output lane-packed (L/2, 2C)."""
    y = y_ref[...].astype(jnp.float32)
    sk = skp_ref[...].astype(jnp.float32)
    c = y.shape[-1]
    x0, x1 = _unpool_select_add(y, sk[:, :c], sk[:, c:])
    o_ref[...] = jnp.concatenate([x0, x1], axis=-1).astype(o_ref.dtype)


def _head_kernel(x_ref, wt_ref, b_ref, a_ref, o_ref):
    """Head Conv1d(k=3)+PReLU that also folds the exit NLC->NCL layout change: the
    contraction is (Cout, 3Cin) x (3Cin, L) (both operands fed transposed to the MXU) so
    the store is a lane-dense (Cout, L) block and no XLA transpose runs on the output."""
    x = x_ref[...]
    im = jnp.concatenate([_prev_rows(x), x, _next_rows(x)], axis=-1).astype(MXU_DTYPE)
    y = jax.lax.dot_general(wt_ref[...], im, (((1,), (1,)), ((), ())),
                            preferred_element_type=jnp.float32)        # (Cout, L)
    y = y + b_ref[...]
    a = a_ref[...]
    o_ref[...] = jnp.where(y > 0, y, a * y).astype(o_ref.dtype)


# --------------------------------------------------------------------------------------
# pallas_call wrappers (all (B,L,C)<->(B,L/k,kC) reshapes are free row-major views)
# --------------------------------------------------------------------------------------

def conv_relu(x, w, b):
    B, L, Cin = x.shape
    Cout = w.shape[1]
    tc = min(Cout, 128)
    return pl.pallas_call(
        _conv_kernel,
        out_shape=jax.ShapeDtypeStruct((B, L, Cout), ACT_DTYPE),
        grid=(B, pl.cdiv(Cout, tc)),
        in_specs=[
            pl.BlockSpec((None, L, Cin), lambda bi, ci: (bi, 0, 0)),   # resident across ci
            pl.BlockSpec((3 * Cin, tc), lambda bi, ci: (0, ci)),
            pl.BlockSpec((1, tc), lambda bi, ci: (0, ci)),
        ],
        out_specs=pl.BlockSpec((None, L, tc), lambda bi, ci: (bi, 0, ci)),
        compiler_params=_cparams("parallel", "parallel"),
        cost_estimate=_ce(2 * B * L * 3 * Cin * Cout, [x, w, b], B * L * Cout * _ISIZE_ACT),
    )(x, w, b)


def conv_relu_pool(x, w, b):
    """Fused conv+ReLU+MaxPool (one 'M').  Returns (pre_pool_skip, pooled)."""
    B, L, Cin = x.shape
    Cout = w.shape[1]
    L2 = L // 2
    xp = x.reshape(B, L2, 2 * Cin)
    out_bytes = (B * L2 * 3 * Cout) * _ISIZE_ACT
    skip_p, pooled = pl.pallas_call(
        _conv_pool_kernel,
        out_shape=(jax.ShapeDtypeStruct((B, L2, 2 * Cout), ACT_DTYPE),
                   jax.ShapeDtypeStruct((B, L2, Cout), ACT_DTYPE)),
        grid=(B,),
        in_specs=[pl.BlockSpec((None, L2, 2 * Cin), lambda bi: (bi, 0, 0)),
                  pl.BlockSpec((3 * Cin, Cout), lambda bi: (0, 0)),
                  pl.BlockSpec((1, Cout), lambda bi: (0, 0))],
        out_specs=(pl.BlockSpec((None, L2, 2 * Cout), lambda bi: (bi, 0, 0)),
                   pl.BlockSpec((None, L2, Cout), lambda bi: (bi, 0, 0))),
        compiler_params=_cparams("parallel"),
        cost_estimate=_ce(2 * B * L * 3 * Cin * Cout, [xp, w, b], out_bytes),
    )(xp, w, b)
    return skip_p.reshape(B, L, Cout), pooled


def conv_relu_pool2(x, w, b):
    """Fused conv+ReLU+MaxPool+MaxPool (the 'M','M' pattern).
    Returns (skip_level1, skip_level2, twice_pooled)."""
    B, L, Cin = x.shape
    Cout = w.shape[1]
    L4 = L // 4
    xq = x.reshape(B, L4, 4 * Cin)
    out_bytes = (B * L4 * 7 * Cout) * _ISIZE_ACT
    skip1_q, skip2_p, pooled = pl.pallas_call(
        _conv_pool2_kernel,
        out_shape=(jax.ShapeDtypeStruct((B, L4, 4 * Cout), ACT_DTYPE),
                   jax.ShapeDtypeStruct((B, L4, 2 * Cout), ACT_DTYPE),
                   jax.ShapeDtypeStruct((B, L4, Cout), ACT_DTYPE)),
        grid=(B,),
        in_specs=[pl.BlockSpec((None, L4, 4 * Cin), lambda bi: (bi, 0, 0)),
                  pl.BlockSpec((3 * Cin, Cout), lambda bi: (0, 0)),
                  pl.BlockSpec((1, Cout), lambda bi: (0, 0))],
        out_specs=(pl.BlockSpec((None, L4, 4 * Cout), lambda bi: (bi, 0, 0)),
                   pl.BlockSpec((None, L4, 2 * Cout), lambda bi: (bi, 0, 0)),
                   pl.BlockSpec((None, L4, Cout), lambda bi: (bi, 0, 0))),
        compiler_params=_cparams("parallel"),
        cost_estimate=_ce(2 * B * L * 3 * Cin * Cout, [xq, w, b], out_bytes),
    )(xq, w, b)
    return skip1_q.reshape(B, L, Cout), skip2_p.reshape(B, L // 2, Cout), pooled


def unpool_add_conv(y, skip, w, b):
    """Fused MaxUnpool1d(2,2) + skip add -> Conv1d(k=3)+ReLU."""
    B, L2, C = y.shape
    Cout = w.shape[1]
    skp = skip.reshape(B, L2, 2 * C)
    out_p = pl.pallas_call(
        _unpool_conv_kernel,
        out_shape=jax.ShapeDtypeStruct((B, L2, 2 * Cout), ACT_DTYPE),
        grid=(B,),
        in_specs=[pl.BlockSpec((None, L2, C), lambda bi: (bi, 0, 0)),
                  pl.BlockSpec((None, L2, 2 * C), lambda bi: (bi, 0, 0)),
                  pl.BlockSpec((3 * C, Cout), lambda bi: (0, 0)),
                  pl.BlockSpec((1, Cout), lambda bi: (0, 0))],
        out_specs=pl.BlockSpec((None, L2, 2 * Cout), lambda bi: (bi, 0, 0)),
        compiler_params=_cparams("parallel"),
        cost_estimate=_ce(2 * B * (2 * L2) * 3 * C * Cout, [y, skp, w, b],
                          B * L2 * 2 * Cout * _ISIZE_ACT),
    )(y, skp, w, b)
    return out_p.reshape(B, 2 * L2, Cout)


def unpool2_add_conv(y, skip2, skip1, w, b):
    """Fused ('U','U',conv): both unpool+add levels and the conv in one kernel."""
    B, L4, C = y.shape
    Cout = w.shape[1]
    sk2 = skip2.reshape(B, L4, 2 * C)
    sk1 = skip1.reshape(B, L4, 4 * C)
    out_q = pl.pallas_call(
        _unpool2_conv_kernel,
        out_shape=jax.ShapeDtypeStruct((B, L4, 4 * Cout), ACT_DTYPE),
        grid=(B,),
        in_specs=[pl.BlockSpec((None, L4, C), lambda bi: (bi, 0, 0)),
                  pl.BlockSpec((None, L4, 2 * C), lambda bi: (bi, 0, 0)),
                  pl.BlockSpec((None, L4, 4 * C), lambda bi: (bi, 0, 0)),
                  pl.BlockSpec((3 * C, Cout), lambda bi: (0, 0)),
                  pl.BlockSpec((1, Cout), lambda bi: (0, 0))],
        out_specs=pl.BlockSpec((None, L4, 4 * Cout), lambda bi: (bi, 0, 0)),
        compiler_params=_cparams("parallel"),
        cost_estimate=_ce(2 * B * (4 * L4) * 3 * C * Cout, [y, sk2, sk1, w, b],
                          B * L4 * 4 * Cout * _ISIZE_ACT),
    )(y, sk2, sk1, w, b)
    return out_q.reshape(B, 4 * L4, Cout)


def maxpool2(x):
    """Fallback standalone MaxPool1d(2,2)."""
    B, L, C = x.shape
    L2 = L // 2
    xp = x.reshape(B, L2, 2 * C)
    return pl.pallas_call(
        _maxpool_kernel,
        out_shape=jax.ShapeDtypeStruct((B, L2, C), ACT_DTYPE),
        grid=(B,),
        in_specs=[pl.BlockSpec((None, L2, 2 * C), lambda bi: (bi, 0, 0))],
        out_specs=pl.BlockSpec((None, L2, C), lambda bi: (bi, 0, 0)),
        compiler_params=_cparams("parallel"),
        cost_estimate=_ce(B * L * C, [xp], B * L2 * C * _ISIZE_ACT),
    )(xp)


def unpool_add(y, skip):
    """Fallback standalone MaxUnpool1d(2,2) + skip add."""
    B, L2, C = y.shape
    skp = skip.reshape(B, L2, 2 * C)
    out_p = pl.pallas_call(
        _unpool_add_kernel,
        out_shape=jax.ShapeDtypeStruct((B, L2, 2 * C), ACT_DTYPE),
        grid=(B,),
        in_specs=[pl.BlockSpec((None, L2, C), lambda bi: (bi, 0, 0)),
                  pl.BlockSpec((None, L2, 2 * C), lambda bi: (bi, 0, 0))],
        out_specs=pl.BlockSpec((None, L2, 2 * C), lambda bi: (bi, 0, 0)),
        compiler_params=_cparams("parallel"),
        cost_estimate=_ce(4 * B * L2 * C, [y, skp], B * L2 * 2 * C * _ISIZE_ACT),
    )(y, skp)
    return out_p.reshape(B, 2 * L2, C)


def head_conv_prelu(x, w_t, b, alpha):
    """Head Conv1d(k=3)+PReLU producing the (B, Cout, L) NCL output directly (f32)."""
    B, L, Cin = x.shape
    Cout = w_t.shape[0]
    return pl.pallas_call(
        _head_kernel,
        out_shape=jax.ShapeDtypeStruct((B, Cout, L), jnp.float32),
        grid=(B,),
        in_specs=[pl.BlockSpec((None, L, Cin), lambda bi: (bi, 0, 0)),
                  pl.BlockSpec((Cout, 3 * Cin), lambda bi: (0, 0)),
                  pl.BlockSpec((Cout, 1), lambda bi: (0, 0)),
                  pl.BlockSpec((Cout, 1), lambda bi: (0, 0))],
        out_specs=pl.BlockSpec((None, Cout, L), lambda bi: (bi, 0, 0)),
        compiler_params=_cparams("parallel"),
        cost_estimate=_ce(2 * B * L * 3 * Cin * Cout, [x, w_t, b, alpha],
                          B * Cout * L * 4),
    )(x, w_t, b, alpha)


# --------------------------------------------------------------------------------------
# Parameter init (PyTorch-style uniform bounds) and forward pass
# --------------------------------------------------------------------------------------

def init_unet_params(settings, key):
    """Conv weights stored flattened to (3*Cin, Cout) in MXU_DTYPE (rows ordered
    [w_k0; w_k1; w_k2] to match the [x[l-1] | x[l] | x[l+1]] im2col); the head weight is
    stored pre-transposed as (Cout, 3*Cin).  Bias / PReLU alpha stay f32."""
    conv_params = []
    in_ch = settings['InChannels']
    for x in settings['ConvLayers']:
        if x in ('M', 'U'):
            continue
        key, kw, kb = jax.random.split(key, 3)
        bound = 1.0 / math.sqrt(in_ch * 3)
        w = jax.random.uniform(kw, (3, in_ch, x), jnp.float32, -bound, bound)
        b = jax.random.uniform(kb, (1, x), jnp.float32, -bound, bound)
        conv_params.append((w.reshape(3 * in_ch, x).astype(MXU_DTYPE), b))
        in_ch = x
    out_ch = settings['OutChannels']
    key, kw, kb = jax.random.split(key, 3)
    bound = 1.0 / math.sqrt(in_ch * 3)
    hw = jax.random.uniform(kw, (3, in_ch, out_ch), jnp.float32, -bound, bound)
    hw_t = jnp.transpose(hw.reshape(3 * in_ch, out_ch)).astype(MXU_DTYPE)   # (Cout, 3Cin)
    hb = jax.random.uniform(kb, (out_ch, 1), jnp.float32, -bound, bound)
    ha = jnp.full((out_ch, 1), 0.25, jnp.float32)          # nn.PReLU(out_channels) init
    return conv_params, (hw_t, hb, ha)


def _build_ops(settings, conv_params):
    ops = []
    p = 0
    for e in settings['ConvLayers']:
        if e in ('M', 'U'):
            ops.append(e)
        else:
            ops.append(conv_params[p])
            p += 1
    return ops


def unet_forward(x_ncl, settings, conv_params, head_params):
    """x_ncl: (B, C_in, L) PyTorch layout -> (B, C_out, L) float32."""
    # TODO(synk): fold this entry NCL->NLC layout change into the first kernel's in_spec.
    y = jnp.transpose(x_ncl, (0, 2, 1)).astype(ACT_DTYPE)
    ops = _build_ops(settings, conv_params)
    skips = []
    i, n = 0, len(ops)
    while i < n:
        op = ops[i]
        if isinstance(op, tuple):                               # Conv1d + ReLU
            w, b = op
            if i + 2 < n and ops[i + 1] == 'M' and ops[i + 2] == 'M':
                skip1, skip2, y = conv_relu_pool2(y, w, b)      # conv+pool+pool fused
                skips += [skip1, skip2]
                i += 3
            elif i + 1 < n and ops[i + 1] == 'M':
                skip1, y = conv_relu_pool(y, w, b)              # conv+pool fused
                skips.append(skip1)
                i += 2
            else:
                y = conv_relu(y, w, b)
                i += 1
        elif op == 'M':
            skips.append(y)
            y = maxpool2(y)
            i += 1
        else:                                                   # 'U'
            if i + 2 < n and ops[i + 1] == 'U' and isinstance(ops[i + 2], tuple):
                sk_deep = skips.pop()
                sk_shallow = skips.pop()
                w, b = ops[i + 2]
                y = unpool2_add_conv(y, sk_deep, sk_shallow, w, b)   # U,U,conv fused
                i += 3
            elif i + 1 < n and isinstance(ops[i + 1], tuple):
                sk = skips.pop()
                w, b = ops[i + 1]
                y = unpool_add_conv(y, sk, w, b)                # U,conv fused
                i += 2
            else:
                sk = skips.pop()
                y = unpool_add(y, sk)
                i += 1
    hw_t, hb, ha = head_params
    return head_conv_prelu(y, hw_t, hb, ha)


# --------------------------------------------------------------------------------------
# Pure-JAX reference mirroring the module semantics and the same dtype policy
# --------------------------------------------------------------------------------------

def _ref_conv(x, w_flat, b):
    xc = x.astype(MXU_DTYPE)
    B, L, Cin = x.shape
    zero = jnp.zeros((B, 1, Cin), MXU_DTYPE)
    x_prev = jnp.concatenate([zero, xc[:, :-1]], axis=1)
    x_next = jnp.concatenate([xc[:, 1:], zero], axis=1)
    xim = jnp.concatenate([x_prev, xc, x_next], axis=-1)
    return jnp.einsum('blk,kc->blc', xim, w_flat,
                      preferred_element_type=jnp.float32) + b


def _ref_maxpool(x):
    B, L, C = x.shape
    x2 = x.reshape(B, L // 2, 2, C)
    return jnp.maximum(x2[:, :, 0], x2[:, :, 1])


def _ref_unpool_add(y, skip):
    B, L2, C = y.shape
    s2 = skip.reshape(B, L2, 2, C)
    take_even = s2[:, :, 0] >= s2[:, :, 1]
    yf = y.astype(jnp.float32)
    ev = jnp.where(take_even, yf, 0.0) + s2[:, :, 0].astype(jnp.float32)
    od = jnp.where(take_even, 0.0, yf) + s2[:, :, 1].astype(jnp.float32)
    return jnp.stack([ev, od], axis=2).reshape(B, 2 * L2, C)


def unet_reference(x_ncl, settings, conv_params, head_params):
    y = jnp.transpose(x_ncl, (0, 2, 1)).astype(ACT_DTYPE)
    skips = []
    p_idx = 0
    for e in settings['ConvLayers']:
        if e == 'M':
            skips.append(y)
            y = _ref_maxpool(y).astype(ACT_DTYPE)
        elif e == 'U':
            y = _ref_unpool_add(y, skips.pop()).astype(ACT_DTYPE)
        else:
            w, b = conv_params[p_idx]
            p_idx += 1
            y = jnp.maximum(_ref_conv(y, w, b), 0.0).astype(ACT_DTYPE)
    hw_t, hb, ha = head_params
    xc = y.astype(MXU_DTYPE)
    B, L, Cin = y.shape
    zero = jnp.zeros((B, 1, Cin), MXU_DTYPE)
    xim = jnp.concatenate([jnp.concatenate([zero, xc[:, :-1]], axis=1), xc,
                           jnp.concatenate([xc[:, 1:], zero], axis=1)], axis=-1)
    yh = jnp.einsum('blk,ck->blc', xim, hw_t,
                    preferred_element_type=jnp.float32) + hb[:, 0]
    yh = jnp.where(yh > 0, yh, ha[:, 0] * yh)
    return jnp.transpose(yh, (0, 2, 1))


# --------------------------------------------------------------------------------------

if __name__ == "__main__":
    B, L = 2, 16
    base = {'InChannels': 4, 'OutChannels': 4}
    # Two configurations to exercise every kernel path:
    #   A: fused 2-level encoder (conv,'M','M'), standalone convs, fused 2-level decoder.
    #   E: fused 1-level encoder/decoder, standalone conv, standalone pool and unpool+add.
    configs = [
        dict(base, ConvLayers=[8, 'M', 'M', 16, 8, 'U', 'U', 8]),
        dict(base, ConvLayers=[8, 'M', 8, 'U', 8, 'M', 'U']),
    ]

    key = jax.random.PRNGKey(0)
    key, xk = jax.random.split(key)
    x = jax.random.normal(xk, (B, base['InChannels'], L), jnp.float32)

    for settings in configs:
        key, pk = jax.random.split(key)
        conv_params, head_params = init_unet_params(settings, pk)

        y = jax.block_until_ready(unet_forward(x, settings, conv_params, head_params))
        assert y.shape == (B, settings['OutChannels'], L), y.shape
        assert y.dtype == jnp.float32, y.dtype

        y_ref = unet_reference(x, settings, conv_params, head_params)
        max_err = float(jnp.max(jnp.abs(y - y_ref)))
        assert jnp.allclose(y, y_ref, atol=2e-2, rtol=2e-2), max_err

    print("KERNEL_OK")
</pallas_src>

<mosaic_0001>
module attributes {stable_mosaic.version = 11 : i64} {
  func.func @_conv_pool2_kernel(%arg0: i32, %arg1: memref<1x4x16xbf16, #tpu.memory_space<vmem>>, %arg2: memref<12x8xbf16, #tpu.memory_space<vmem>>, %arg3: memref<1x8xf32, #tpu.memory_space<vmem>>, %arg4: memref<1x4x32xbf16, #tpu.memory_space<vmem>>, %arg5: memref<1x4x16xbf16, #tpu.memory_space<vmem>>, %arg6: memref<1x4x8xbf16, #tpu.memory_space<vmem>>) attributes {dimension_semantics = [#tpu.dimension_semantics<parallel>], iteration_bounds = array<i64: 2>, scalar_prefetch = 0 : i64, scratch_operands = 0 : i64, tpu.core_type = #tpu.core_type<tc>, window_params = [{transform_indices = @transform_0, window_bounds = array<i64: 1, 4, 16>}, {pipeline_mode = #tpu.pipeline_mode<synchronous>, transform_indices = @transform_1, window_bounds = array<i64: 12, 8>}, {pipeline_mode = #tpu.pipeline_mode<synchronous>, transform_indices = @transform_2, window_bounds = array<i64: 1, 8>}, {transform_indices = @transform_3, window_bounds = array<i64: 1, 4, 32>}, {transform_indices = @transform_4, window_bounds = array<i64: 1, 4, 16>}, {transform_indices = @transform_5, window_bounds = array<i64: 1, 4, 8>}]} {
    %c0 = arith.constant 0 : index
    %c0_0 = arith.constant 0 : index
    %c0_1 = arith.constant 0 : index
    %0 = vector.load %arg1[%c0, %c0_0, %c0_1] : memref<1x4x16xbf16, #tpu.memory_space<vmem>>, vector<1x4x16xbf16>
    %1 = vector.shape_cast %0 : vector<1x4x16xbf16> to vector<4x16xbf16>
    %2 = vector.extract_strided_slice %1 {offsets = [0, 0], sizes = [4, 4], strides = [1, 1]} : vector<4x16xbf16> to vector<4x4xbf16>
    %3 = vector.extract_strided_slice %1 {offsets = [0, 4], sizes = [4, 4], strides = [1, 1]} : vector<4x16xbf16> to vector<4x4xbf16>
    %4 = vector.extract_strided_slice %1 {offsets = [0, 8], sizes = [4, 4], strides = [1, 1]} : vector<4x16xbf16> to vector<4x4xbf16>
    %5 = vector.extract_strided_slice %1 {offsets = [0, 12], sizes = [4, 4], strides = [1, 1]} : vector<4x16xbf16> to vector<4x4xbf16>
    %c0_2 = arith.constant 0 : index
    %c0_3 = arith.constant 0 : index
    %6 = vector.load %arg2[%c0_2, %c0_3] : memref<12x8xbf16, #tpu.memory_space<vmem>>, vector<12x8xbf16>
    %c0_4 = arith.constant 0 : index
    %c0_5 = arith.constant 0 : index
    %7 = vector.load %arg3[%c0_4, %c0_5] : memref<1x8xf32, #tpu.memory_space<vmem>>, vector<1x8xf32>
    %cst = arith.constant 0.000000e+00 : bf16
    %8 = vector.broadcast %cst : bf16 to vector<1x4xbf16>
    %9 = vector.extract_strided_slice %5 {offsets = [0, 0], sizes = [3, 4], strides = [1, 1]} : vector<4x4xbf16> to vector<3x4xbf16>
    %10 = tpu.concatenate %8, %9 in 0 : vector<1x4xbf16>, vector<3x4xbf16> -> vector<4x4xbf16>
    %11 = tpu.concatenate %10, %2, %3 in 1 : vector<4x4xbf16>, vector<4x4xbf16>, vector<4x4xbf16> -> vector<4x12xbf16>
    %12 = tpu.concatenate %2, %3, %4 in 1 : vector<4x4xbf16>, vector<4x4xbf16>, vector<4x4xbf16> -> vector<4x12xbf16>
    %13 = tpu.concatenate %3, %4, %5 in 1 : vector<4x4xbf16>, vector<4x4xbf16>, vector<4x4xbf16> -> vector<4x12xbf16>
    %14 = vector.extract_strided_slice %2 {offsets = [1, 0], sizes = [3, 4], strides = [1, 1]} : vector<4x4xbf16> to vector<3x4xbf16>
    %cst_6 = arith.constant 0.000000e+00 : bf16
    %15 = vector.broadcast %cst_6 : bf16 to vector<1x4xbf16>
    %16 = tpu.concatenate %14, %15 in 0 : vector<3x4xbf16>, vector<1x4xbf16> -> vector<4x4xbf16>
    %17 = tpu.concatenate %4, %5, %16 in 1 : vector<4x4xbf16>, vector<4x4xbf16>, vector<4x4xbf16> -> vector<4x12xbf16>
    %18 = tpu.concatenate %11, %12, %13, %17 in 0 : vector<4x12xbf16>, vector<4x12xbf16>, vector<4x12xbf16>, vector<4x12xbf16> -> vector<16x12xbf16>
    %cst_7 = arith.constant dense<0.000000e+00> : vector<16x8xf32>
    %19 = tpu.matmul %18, %6, %cst_7 {dimension_numbers = #tpu.dot_dimension_numbers<[1], [0], [0], [1], [0, 0, 1, 1], [], []>} : vector<16x12xbf16>, vector<12x8xbf16>, vector<16x8xf32> -> vector<16x8xf32>
    %20 = vector.broadcast %7 : vector<1x8xf32> to vector<16x8xf32>
    %21 = arith.addf %19, %20 : vector<16x8xf32>
    %cst_8 = arith.constant 0.000000e+00 : f32
    %22 = vector.broadcast %cst_8 : f32 to vector<16x8xf32>
    %23 = arith.maximumf %21, %22 : vector<16x8xf32>
    %24 = vector.extract_strided_slice %23 {offsets = [0, 0], sizes = [4, 8], strides = [1, 1]} : vector<16x8xf32> to vector<4x8xf32>
    %25 = vector.extract_strided_slice %23 {offsets = [4, 0], sizes = [4, 8], strides = [1, 1]} : vector<16x8xf32> to vector<4x8xf32>
    %26 = vector.extract_strided_slice %23 {offsets = [8, 0], sizes = [4, 8], strides = [1, 1]} : vector<16x8xf32> to vector<4x8xf32>
    %27 = vector.extract_strided_slice %23 {offsets = [12, 0], sizes = [4, 8], strides = [1, 1]} : vector<16x8xf32> to vector<4x8xf32>
    %28 = tpu.concatenate %24, %25, %26, %27 in 1 : vector<4x8xf32>, vector<4x8xf32>, vector<4x8xf32>, vector<4x8xf32> -> vector<4x32xf32>
    %29 = arith.truncf %28 : vector<4x32xf32> to vector<4x32xbf16>
    %c0_9 = arith.constant 0 : index
    %c0_10 = arith.constant 0 : index
    %c0_11 = arith.constant 0 : index
    %30 = vector.load %arg4[%c0_9, %c0_10, %c0_11] : memref<1x4x32xbf16, #tpu.memory_space<vmem>>, vector<1x4x32xbf16>
    %31 = vector.shape_cast %30 : vector<1x4x32xbf16> to vector<4x32xbf16>
    %32 = vector.shape_cast %29 : vector<4x32xbf16> to vector<1x4x32xbf16>
    tpu.vector_store %arg4[%c0_9, %c0_10, %c0_11], %32 {strides = array<i32>} : memref<1x4x32xbf16, #tpu.memory_space<vmem>>, vector<1x4x32xbf16>,
    %33 = arith.maximumf %24, %25 : vector<4x8xf32>
    %34 = arith.maximumf %26, %27 : vector<4x8xf32>
    %35 = tpu.concatenate %33, %34 in 1 : vector<4x8xf32>, vector<4x8xf32> -> vector<4x16xf32>
    %36 = arith.truncf %35 : vector<4x16xf32> to vector<4x16xbf16>
    %c0_12 = arith.constant 0 : index
    %c0_13 = arith.constant 0 : index
    %c0_14 = arith.constant 0 : index
    %37 = vector.load %arg5[%c0_12, %c0_13, %c0_14] : memref<1x4x16xbf16, #tpu.memory_space<vmem>>, vector<1x4x16xbf16>
    %38 = vector.shape_cast %37 : vector<1x4x16xbf16> to vector<4x16xbf16>
    %39 = vector.shape_cast %36 : vector<4x16xbf16> to vector<1x4x16xbf16>
    tpu.vector_store %arg5[%c0_12, %c0_13, %c0_14], %39 {strides = array<i32>} : memref<1x4x16xbf16, #tpu.memory_space<vmem>>, vector<1x4x16xbf16>,
    %40 = arith.maximumf %33, %34 : vector<4x8xf32>
    %41 = arith.truncf %40 : vector<4x8xf32> to vector<4x8xbf16>
    %c0_15 = arith.constant 0 : index
    %c0_16 = arith.constant 0 : index
    %c0_17 = arith.constant 0 : index
    %42 = vector.load %arg6[%c0_15, %c0_16, %c0_17] : memref<1x4x8xbf16, #tpu.memory_space<vmem>>, vector<1x4x8xbf16>
    %43 = vector.shape_cast %42 : vector<1x4x8xbf16> to vector<4x8xbf16>
    %44 = vector.shape_cast %41 : vector<4x8xbf16> to vector<1x4x8xbf16>
    tpu.vector_store %arg6[%c0_15, %c0_16, %c0_17], %44 {strides = array<i32>} : memref<1x4x8xbf16, #tpu.memory_space<vmem>>, vector<1x4x8xbf16>,
    return
  }
  func.func @transform_0(%arg0: i32) -> (i32, i32, i32) {
    %c0_i32 = arith.constant 0 : i32
    %c0_i32_0 = arith.constant 0 : i32
    %c0_i32_1 = arith.constant 0 : i32
    return %arg0, %c0_i32, %c0_i32_0 : i32, i32, i32
  }
  func.func @transform_1(%arg0: i32) -> (i32, i32) {
    %c0_i32 = arith.constant 0 : i32
    %c0_i32_0 = arith.constant 0 : i32
    %c0_i32_1 = arith.constant 0 : i32
    return %c0_i32, %c0_i32_0 : i32, i32
  }
  func.func @transform_2(%arg0: i32) -> (i32, i32) {
    %c0_i32 = arith.constant 0 : i32
    %c0_i32_0 = arith.constant 0 : i32
    %c0_i32_1 = arith.constant 0 : i32
    return %c0_i32, %c0_i32_0 : i32, i32
  }
  func.func @transform_3(%arg0: i32) -> (i32, i32, i32) {
    %c0_i32 = arith.constant 0 : i32
    %c0_i32_0 = arith.constant 0 : i32
    %c0_i32_1 = arith.constant 0 : i32
    return %arg0, %c0_i32, %c0_i32_0 : i32, i32, i32
  }
  func.func @transform_4(%arg0: i32) -> (i32, i32, i32) {
    %c0_i32 = arith.constant 0 : i32
    %c0_i32_0 = arith.constant 0 : i32
    %c0_i32_1 = arith.constant 0 : i32
    return %arg0, %c0_i32, %c0_i32_0 : i32, i32, i32
  }
  func.func @transform_5(%arg0: i32) -> (i32, i32, i32) {
    %c0_i32 = arith.constant 0 : i32
    %c0_i32_0 = arith.constant 0 : i32
    %c0_i32_1 = arith.constant 0 : i32
    return %arg0, %c0_i32, %c0_i32_0 : i32, i32, i32
  }
}

</mosaic_0001>

<bundles_post_ra>
// kernel: tpu_custom_call.1
= control target key start
LH: loop header
LB: loop body
LE: loop exit
PB: predicated region body
PF: predicated region fallthrough
CT: control target
= control target key end

     0   :  { %11 = vsyncpa [#allocation3], 0  ;;  %s1021_s0 = inlined_call_operand.vmem [shape: bf16[2,4,16], index: 0, kind: input, shape index: {}]   ;;  %s1022_s1 = inlined_call_operand.vmem [shape: bf16[12,8], index: 1, kind: input, shape index: {}]   ;;  %s1023_s2 = inlined_call_operand.vmem [shape: f32[1,8], index: 2, kind: input, shape index: {}]   ;;  %s1024_s3 = inlined_call_operand.hbm [shape: bf16[2,4,32], index: 3, kind: output, shape index: {0}]   ;;  %s1025_s4 = inlined_call_operand.hbm [shape: bf16[2,4,16], index: 4, kind: output, shape index: {1}]   ;;  %s1026_s5 = inlined_call_operand.hbm [shape: bf16[2,4,8], index: 5, kind: output, shape index: {2}]  }
   0x1   :  { %13 = vsyncpa [#allocation3 + $0x1], 0 }
   0x2   :  { %14 = vsyncpa [#allocation5], 0 }
   0x3   :  { %16 = vsyncpa [#allocation5 + $0x1], 0  ;;  %s829_s18 = smov 0   ;;  %s831_s19 = smov 0  }
   0x4   :  { %s833_s20 = smov 0   ;;  %s835_s21 = smov 0  }
   0x5 LB: > { %s850_s22 = sadd.s32 4294967295, %s784_s21   ;;  %s1027_s23 = sadd.s32 4294967294, %s784_s21   ;;  %s784_s21 = sphi %s835_s21, %s1038_s21   ;;  %s780_s20 = sphi %s833_s20, %s1037_s20   ;;  %s776_s19 = sphi %s831_s19, %s1036_s19   ;;  %s772_s18 = sphi %s829_s18, %s1035_s18  }
   0x6   : > { %s854_s24 = sadd.s32 1, %s784_s21   ;;  %s97_s25 = sadd.s32 1, %s780_s20 }
   0x7   : > { %s94_s26 = ssub.s32 %s784_s21, %s854_s24  ;;  %p107_p0 = scmp.ne.s32.totalorder %s780_s20, %s776_s19 }
   0x8   : > { %p95_p1 = scmp.eq.s32.totalorder %s94_s26, 0  ;;  %p108_p2 = scmp.eq.s32.totalorder %s850_s22, 1 }
   0x9   : > { %p113_p3 = scmp.ne.s32.totalorder %s776_s19, %s772_s18  ;;  %p114_p4 = scmp.eq.s32.totalorder %s1027_s23, 1 }
   0xa   : > { %s867_s27 = scalar_select %p95_p1, %s780_s20, %s97_s25  }
   0xb   : > { %p869_p5 = por %p108_p2, %p107_p0  ;;  %p873_p6 = por %p114_p4, %p113_p3 }
   0xc   : > { %p579_p7 = scmp.ge.s32.totalorder %s784_s21, 1  ;;  %p197_p8 = scmp.lt.s32.totalorder %s784_s21, 3 }
   0xe   : > { %p198_p9 = pnand %p579_p7, %p197_p8 }
   0xf   : > { %p234_p10 = scmp.lt.s32.totalorder (!%p198_p9), %s850_s22, 1  ;;  %s789_s12 = smov (!%p198_p9), 4  }
  0x10   : > { %201 = sbr.rel (%p198_p9) target bundleno = 544 (0x220), region = 32  ;;  %s790_s13 = smov (!%p198_p9), 124  }
  0x11   : > { %s791_s14 = smov (!%p198_p9), 120   ;;  %s792_s15 = smov (!%p198_p9), 116  }
  0x12   : > { %s793_s16 = smov (!%p198_p9), 8   ;;  %s1028_s26 = sand.u32 (!%p198_p9), 1, %s776_s19  }
  0x13   : > { %s795_s8 = smov (!%p198_p9), 24   ;;  %s411_s9 = sand.u32 (!%p198_p9), 1, %s850_s22  }
  0x14   : > { %s590_s10 = sshll.u32 (!%p198_p9), %s850_s22, 5  ;;  %s933_s23 = scalar_lea.sflag (!%p198_p9), [#allocation5], %s411_s9 }
  0x15   : > { %v247_v0 = vlaneseq  ;;  %v786_v1 = vmov 1983009808   ;;  %s235_s30 = scalar_select %p234_p10, %s850_s22, 1  ;;  %v667_v5 = vld [vmem:[%s1022_s1] sm:$0x3f]   ;;  %vm306_vm0 = vcmask 1045504  }
  0x16   : > { %v245_v2 = vunpack.c.l.s4 %v786_v1  ;;  %v787_v8 = vmov 0.0   ;;  %v324_v9 = vsel %vm306_vm0, %v667_v5, 0  ;;  %vm788_vm1 = vmmov 0   ;;  %v584_v33 = vld [vmem:[%s1023_s2] ss:$0 sm:$0xff]  ;;  %s796_s25 = smov [#allocation4]  }
  0x17   : > { %v248_v3 = vshrl.u32 %v247_v0, 7  ;;  %s583_s6 = sshll.u32 %s235_s30, 1  ;;  %597 = vmatprep.subr.bf16.mxu0 %v787_v8  ;;  %599 = vmatprep.mubr.msk.bf16.mxu0 %vm788_vm1, %v787_v8  ;;  %vm282_vm2 = vcmask 1041408   ;;  %vm283_vm3 = vsmask.f32 1280  ;;  %vm261_vm5 = vcmask 1040384  }
  0x18   : > { %v246_v4 = vunpack.c.0.s8 %v245_v2  ;;  %s237_s11 = scalar_lea.vmem %s1021_s0, %s583_s6  ;;  %598 = vmatpush3.bf16.msra.mxu0 %v324_v9  ;;  %vm284_vm4 = vmand %vm282_vm2, %vm283_vm3  ;;  %vm262_vm6 = vsmask.f32 256  ;;  %vm267_vm8 = vcmask 31744   ;;  %vm271_vm9 = vcmask 64512   ;;  %s794_s30 = smov 16  }
  0x19   : > { %v239_v7 = vld [vmem:[%s237_s11] sm:$0x3]  ;;  %vm263_vm7 = vmand %vm261_vm5, %vm262_vm6  ;;  %vm303_vm10 = vcmask 1043456   ;;  %vm320_vm11 = vcmask 97280   ;;  %s900_s6 = sshll.u32 %s1028_s26, 1  ;;  %vm404_vm12 = vcmask 58368  }
  0x1a   : > { %v249_v6 = vsub.s32 %v246_v4, %v248_v3  ;;  %v295_v20 = vrot.slane %v239_v7, 6  ;;  %s233_s7 = scalar_lea.vmem [#allocation6], %s900_s6  ;;  %vm383_vm13 = vcmask 130048   ;;  %s226_s11 = scalar_lea.vmem [#allocation4], %s900_s6  ;;  %vm385_vm14 = vcmask 195584  }
  0x1b   : > { %vm400_vm15 = vcmask 123904   ;;  %s1029_s17 = scalar_lea.vmem [#allocation2], %s900_s6 }
  0x1c   : > { %v250_v10 = vrot.slane %v239_v7, %v249_v6  ;;  %s430_s22 = sshll.u32 %s1029_s17, 4  ;;  %s931_s22 = int_to_ptr.vmem [resolvable:$true] %s430_s22 }
  0x1e   : > { %265 = vrot.lane.b32.xlu0 %v250_v10, %s789_s12  ;;  %275 = vrot.lane.b32.xlu1 %v250_v10, %s790_s13  ;;  %v252_v11 = vshrl.u32 %v250_v10, 16  ;;  %v255_v12 = vshll.u32 %v250_v10, 16  ;;  %s443_s12 = sshll.u32 %s226_s11, 4  ;;  %s456_s13 = sshll.u32 %s233_s7, 4  ;;  %s917_s12 = int_to_ptr.vmem [resolvable:$true] %s443_s12  ;;  %s924_s13 = int_to_ptr.vmem [resolvable:$true] %s456_s13 }
  0x1f   : > { %s668_s26 = scalar_lea.vmem %s917_s12, 32 }
  0x20   : > { %v254_v13 = vrot.slane %v252_v11, 7  ;;  %v279_v14 = vrot.slane %v255_v12, 1  ;;  %p669_p11 = scmp.ne.s32.totalorder %s917_s12, %s668_s26 }
  0x22   : > { %v257_v15 = vor.u32 %v255_v12, %v254_v13  ;;  %286 = vrot.lane.b32.xlu1 %v250_v10, %s791_s14  ;;  %v280_v16 = vor.u32 %v279_v14, %v252_v11  ;;  %p670_p12 = pnand %p669_p11, %p869_p5 }
  0x24   : > { %258 = vrot.lane.b32.xlu0 %v257_v15, %s792_s15  ;;  %v285_v17 = vsel %vm284_vm4, %v280_v16, 0  ;;  %s929_s15 = scalar_lea.hbm %s1024_s3, %s590_s10  ;;  %p671_p13 = pneg %p670_p12 }
  0x28   : > { %289 = vrot.lane.b32.xlu0 %v285_v17, %s793_s16 }
  0x90   : > { %v266_v18 = vpop.permute.xlu0 %265  ;;  %v276_v19 = vpop.permute.xlu1 %275 }
  0x91   : > { %v297_v28 = vrot.slane %v276_v19, 4 }
  0x94   : > { %v287_v24 = vpop.permute.xlu1 %286 }
  0x96   : > { %v259_v21 = vpop.permute.xlu0 %258 }
  0x97   : > { %v264_v22 = vsel %vm263_vm7, 0, %v259_v21 }
  0x98   : > { %v270_v23 = vsel %vm267_vm8, %v264_v22, %v266_v18 }
  0x99   : > { %v272_v25 = vsel %vm271_vm9, %v270_v23, %v266_v18 }
  0x9a   : > { %v302_v26 = vsel %vm282_vm2, %v272_v25, %v295_v20  ;;  %v290_v27 = vpop.permute.xlu0 %289 }
  0x9b   : > { %v293_v29 = vsel %vm271_vm9, %v287_v24, %v290_v27  ;;  %v305_v31 = vsel %vm303_vm10, %v302_v26, %v297_v28 }
  0x9c   : > { %v299_v30 = vrot.slane %v293_v29, 2 }
  0x9e   : > { %v308_v32 = vsel %vm306_vm0, %v305_v31, %v299_v30  ;;  %vm388_vm0 = vcmask 254976  }
  0x9f   : > { %600 = vmatmul.mubr.msk.bf16.vlgmr.msra.gmra.mxu0 %vm320_vm11, %v308_v32 }
 0x15f   : > { %v360_v34 = vpop.f32.mrf.mxu0 }
 0x160   : > { %v361_v35 = vadd.f32 %v584_v33, %v360_v34 }
 0x161   : > { %v601_v36 = vpop.f32.mrf.mxu0 }
 0x162   : > { %v367_v37 = vmax.f32 %v361_v35, 0.0 }
 0x163   : > { %v363_v38 = vpop.f32.mrf.mxu0 }
 0x164   : > { %v364_v39 = vadd.f32 %v584_v33, %v363_v38  ;;  %v370_v41 = vrot.slane %v367_v37, 4 }
 0x165   : > { %v602_v40 = vpop.f32.mrf.mxu0 }
 0x166   : > { %v368_v42 = vmax.f32 %v364_v39, 0.0  ;;  %v391_v44 = vmax.f32 %v367_v37, %v370_v41 }
 0x168   : > { %v378_v43 = vrot.slane %v368_v42, 4  ;;  %375 = vrot.lane.b32.xlu0 %v368_v42, %s794_s30  ;;  %s672_s30 = sshll.u32 %s796_s25, 4  ;;  %s673_s30 = int_to_ptr.vmem [resolvable:$false] %s672_s30 }
 0x169   : > { %s674_s17 = scalar_lea.vmem %s673_s30, 64  ;;  %p675_p0 = scmp.lt.s32.totalorder %s917_s12, %s673_s30 }
 0x16a   : > { %v393_v45 = vmax.f32 %v368_v42, %v378_v43  ;;  %p676_p1 = scmp.lt.s32.totalorder %s674_s17, %s668_s26 }
 0x16c   : > { %v402_v46 = vmax.f32 %v391_v44, %v393_v45  ;;  %v662_v47 = vpack.i.bf16 %v393_v45, %v370_v41  ;;  %p677_p2 = por %p676_p1, %p675_p0 }
 0x16e   : > { %v403_v48 = vpack.c.bf16 %v402_v46, %v402_v46  ;;  %663 = vrot.lane.b32.xlu1 %v662_v47, %s793_s16  ;;  %s912_s16 = scalar_lea.hbm %s1025_s4, %s590_s10  ;;  %p678_p3 = pnand %p677_p2, %p671_p13 }
 0x170   : > { %405 = vst.msk [vmem:[%s233_s7] sm:$0x3] %vm404_vm12, %v403_v48  ;;  %s922_s7 = scalar_lea.hbm %s1026_s5, %s590_s10 }
 0x172   : > { %379 = vrot.lane.b32.xlu1 %v378_v43, %s795_s8 }
 0x1da   : > { %v376_v52 = vpop.permute.xlu0 %375 }
 0x1e0   : > { %v664_v49 = vpop.permute.xlu1 %663 }
 0x1e1   : > { %v666_v50 = vunpack.i.h.bf16 %v664_v49  ;;  %v665_v51 = vunpack.i.l.bf16 %v664_v49 }
 0x1e3   : > { %v398_v53 = vsel %vm271_vm9, %v391_v44, %v666_v50  ;;  %v382_v54 = vsel %vm271_vm9, %v367_v37, %v665_v51 }
 0x1e4   : > { %v399_v55 = vpack.c.bf16 %v398_v53, %v398_v53  ;;  %v380_v56 = vpop.permute.xlu1 %379  ;;  %v384_v57 = vsel %vm383_vm13, %v382_v54, %v376_v52 }
 0x1e5   : > { %v386_v58 = vsel %vm385_vm14, %v384_v57, %v380_v56 }
 0x1e6   : > { %v387_v59 = vpack.c.bf16 %v386_v58, %v386_v58  ;;  %401 = vst.msk [vmem:[%s226_s11] sm:$0x3] %vm400_vm15, %v399_v55 }
 0x1e7   : > { %681 = shalt.err (!%p678_p3)
}
 0x1e8   : > { %s682_s9 = scalar_lea.hbm %s912_s16, 32  ;;  %s686_s8 = scalar_lea.hbm %s1025_s4, 64 }
 0x1e9   : > { %p683_p4 = scmp.ne.s32.totalorder %s912_s16, %s682_s9  ;;  %p687_p9 = scmp.lt.s32.totalorder %s912_s16, %s1025_s4 }
 0x1ea   : > { %p688_p10 = scmp.lt.s32.totalorder %s686_s8, %s682_s9 }
 0x1eb   : > { %p684_p7 = pnand %p683_p4, %p869_p5 }
 0x1ec   : > { %p689_p11 = por %p688_p10, %p687_p9 }
 0x1ed   : > { %p685_p8 = pneg %p684_p7 }
 0x1ef   : > { %p690_p12 = pnand %p689_p11, %p685_p8 }
 0x1f1   : > { %693 = shalt.err (!%p690_p12)
}
 0x1f2   : > { %604 = dma.vmem_to_hbm [thread:$0]  (%p869_p5), %s917_s12, 32, %s912_s16, %s933_s23  }
 0x1f3   : > { %s1032_s26 = scalar_lea.vmem [#allocation2], %s900_s6  ;;  %s694_s17 = scalar_lea.vmem %s924_s13, 32 }
 0x1f4   : > { %389 = vst.msk [vmem:[%s1032_s26] sm:$0x3] %vm388_vm0, %v387_v59  ;;  %p695_p13 = scmp.ne.s32.totalorder %s924_s13, %s694_s17  ;;  %s797_s30 = smov [#allocation6]  }
 0x1f5   : > { %s698_s9 = sshll.u32 %s797_s30, 4  ;;  %s699_s9 = int_to_ptr.vmem [resolvable:$false] %s698_s9 }
 0x1f6   : > { %p696_p0 = pnand %p695_p13, %p869_p5  ;;  %s700_s10 = scalar_lea.vmem %s699_s9, 64 }
 0x1f7   : > { %p701_p2 = scmp.lt.s32.totalorder %s924_s13, %s699_s9  ;;  %p702_p3 = scmp.lt.s32.totalorder %s700_s10, %s694_s17 }
 0x1f8   : > { %p697_p1 = pneg %p696_p0 }
 0x1f9   : > { %p703_p4 = por %p702_p3, %p701_p2 }
 0x1fb   : > { %p704_p7 = pnand %p703_p4, %p697_p1 }
 0x1fd   : > { %707 = shalt.err (!%p704_p7)
}
 0x1fe   : > { %s708_s6 = scalar_lea.hbm %s922_s7, 32  ;;  %s712_s11 = scalar_lea.hbm %s1026_s5, 64 }
 0x1ff   : > { %p709_p8 = scmp.ne.s32.totalorder %s922_s7, %s708_s6  ;;  %p713_p11 = scmp.lt.s32.totalorder %s922_s7, %s1026_s5 }
 0x200   : > { %p714_p12 = scmp.lt.s32.totalorder %s712_s11, %s708_s6 }
 0x201   : > { %p710_p9 = pnand %p709_p8, %p869_p5 }
 0x202   : > { %p715_p13 = por %p714_p12, %p713_p11 }
 0x203   : > { %p711_p10 = pneg %p710_p9 }
 0x205   : > { %p716_p0 = pnand %p715_p13, %p711_p10 }
 0x207   : > { %719 = shalt.err (!%p716_p0)
}
 0x208   : > { %605 = dma.vmem_to_hbm [thread:$0]  (%p869_p5), %s924_s13, 32, %s922_s7, %s933_s23  }
 0x209   : > { %s1033_s25 = sand.u32 1, %s776_s19   ;;  %s720_s17 = scalar_lea.vmem %s931_s22, 32 }
 0x20a   : > { %s407_s26 = scalar_lea.sflag [#allocation3], %s1033_s25  ;;  %p721_p1 = scmp.ne.s32.totalorder %s931_s22, %s720_s17 }
 0x20b   : > { %s798_s30 = smov [#allocation2]  }
 0x20c   : > { %p722_p2 = pnand %p721_p1, %p869_p5  ;;  %s724_s9 = sshll.u32 %s798_s30, 4  ;;  %s725_s9 = int_to_ptr.vmem [resolvable:$false] %s724_s9 }
 0x20d   : > { %s726_s10 = scalar_lea.vmem %s725_s9, 64  ;;  %p727_p4 = scmp.lt.s32.totalorder %s931_s22, %s725_s9 }
 0x20e   : > { %p723_p3 = pneg %p722_p2  ;;  %p728_p7 = scmp.lt.s32.totalorder %s726_s10, %s720_s17 }
 0x210   : > { %p729_p8 = por %p728_p7, %p727_p4 }
 0x212   : > { %p730_p9 = pnand %p729_p8, %p723_p3 }
 0x214   : > { %733 = shalt.err (!%p730_p9)
}
 0x215   : > { %s734_s23 = scalar_lea.hbm %s929_s15, 32  ;;  %s738_s6 = scalar_lea.hbm %s1024_s3, 64 }
 0x216   : > { %p735_p10 = scmp.ne.s32.totalorder %s929_s15, %s734_s23  ;;  %p739_p13 = scmp.lt.s32.totalorder %s929_s15, %s1024_s3 }
 0x217   : > { %p740_p0 = scmp.lt.s32.totalorder %s738_s6, %s734_s23 }
 0x218   : > { %p736_p11 = pnand %p735_p10, %p869_p5 }
 0x219   : > { %p741_p1 = por %p740_p0, %p739_p13 }
 0x21a   : > { %p737_p12 = pneg %p736_p11 }
 0x21c   : > { %p742_p2 = pnand %p741_p1, %p737_p12 }
 0x21e   : > { %745 = shalt.err (!%p742_p2)
}
 0x21f   : > { %603 = dma.vmem_to_hbm [thread:$0]  (%p869_p5), %s931_s22, 32, %s929_s15, %s407_s26  }
 0x220 PF: > { %p619_p3 = scmp.ge.s32.totalorder %s784_s21, 2  ;;  %s468_s11 = sand.u32 1, %s772_s18  }
 0x221   : > { %s469_s8 = scalar_lea.sflag [#allocation3], %s468_s11 }
 0x222   : > { %p610_p4 = pnand %p619_p3, %p873_p6 }
 0x224   : > { %p611_p7 = pneg %p610_p4 }
 0x226   : > { %763 = dma.done.wait (%p611_p7), %s469_s8, 32  }
 0x227   : > { %765 = vsyncadd (%p611_p7), %s469_s8, 4294967264  ;;  %s1034_s14 = sadd.s32 4294967294, %s784_s21  }
 0x228   : > { %s477_s25 = sand.u32 1, %s1034_s14  }
 0x229   : > { %s478_s17 = scalar_lea.sflag [#allocation5], %s477_s25 }
 0x22a   : > { %767 = dma.done.wait (%p611_p7), %s478_s17, 64  }
 0x22b   : > { %769 = vsyncadd (%p611_p7), %s478_s17, 4294967232  ;;  %p19_p5 = scmp.ge.s32.totalorder %s854_s24, 4   ;;  %s1035_s18 = smov %s776_s19 }
 0x22c   : > { %s1036_s19 = smov %s780_s20  ;;  %s1037_s20 = smov %s867_s27 }
 0x22d   : > { %s1038_s21 = smov %s854_s24  ;;  %21 = sbr.rel (!%p19_p5) target bundleno = 5 (0x5), region = 99 }
 0x232   :  { %492 = vsyncpa [#allocation3], 1 }
 0x233   :  { %494 = vsyncpa [#allocation3 + $0x1], 1 }
 0x234   :  { %495 = vsyncpa [#allocation5], 1 }
 0x235   :  { %497 = vsyncpa [#allocation5 + $0x1], 1 }

</bundles_post_ra>
